<compile_context>
chip_gen: v6e
topology: v6e:2x2x1
jax: 0.10.0
libtpu: 0.0.40
codegen_flags: <defaults>
</compile_context>

<pallas_src>
import functools

import jax
import jax.numpy as jnp
from jax import lax
from jax.experimental import pallas as pl
from jax.experimental.pallas import tpu as pltpu


HIDDEN = 64


def _stable_softplus(x):
    # numerically stable softplus: max(x,0) + log1p(exp(-|x|))
    return jnp.maximum(x, 0.0) + jnp.log1p(jnp.exp(-jnp.abs(x)))


def actor_critic_kernel(action_dim, x_ref, w1_ref, b1_ref, w2_ref, b2_ref, out_ref):
    # x_ref  : [S,   TB]  f32   (feature-major: batch on lanes)
    # w1_ref : [3H,  S ]  f32/bf16
    # b1_ref : [3H,  1 ]  f32
    # w2_ref : [OUT, 3H]  f32/bf16 (block-diagonal -> 3 independent branches)
    # b2_ref : [OUT, 1 ]  f32
    # out_ref: [OUT, TB]  f32
    xt = x_ref[...]
    w1 = w1_ref[...]
    # Fused first layer for all three branches: [3H, TB], f32 accumulation.
    h = jnp.dot(w1, xt.astype(w1.dtype), preferred_element_type=jnp.float32)
    h = jnp.maximum(h + b1_ref[...], 0.0)

    w2 = w2_ref[...]
    # Fused (block-diagonal) second layer: [OUT, TB] = [2A+1, TB]
    z = jnp.dot(w2, h.astype(w2.dtype), preferred_element_type=jnp.float32)
    z = z + b2_ref[...]

    # Per-row epilogue (rows are sublanes, batch is lane-dense):
    #   rows [0, A)   -> mu    = 2 * tanh(z)
    #   rows [A, 2A)  -> sigma = softplus(clamp(z, min=-4.5))
    #   row  2A       -> value = z
    row = lax.broadcasted_iota(jnp.int32, z.shape, 0)
    mu_part = 2.0 * jnp.tanh(z)
    sigma_part = _stable_softplus(jnp.maximum(z, -4.5))
    out_ref[...] = jnp.where(
        row < action_dim, mu_part, jnp.where(row < 2 * action_dim, sigma_part, z)
    )


def _tpu_vmem_capacity_bytes():
    try:
        return int(pltpu.get_tpu_info().vmem_capacity_bytes)
    except Exception:
        return 64 << 20  # conservative default (v7x per-TC physical VMEM)


def _choose_batch_tile(B):
    """Pick the batch tile (lane dim of all blocks).

    - big enough to amortize ~0.35 us/grid-step overhead,
    - multiple of 128 on the lane dim (or the full batch for tiny batches),
    - capped for v7x's smaller VMEM,
    - >= 2 grid steps when B >= 256 so v7x megacore can shard the batch axis.
    """
    vmem = _tpu_vmem_capacity_bytes()
    tb_cap = 8192 if vmem >= (128 << 20) else 4096  # v5e/v6e vs v7x (64 MiB)
    if B < 256:
        return B  # single tile; lane dim equals full array dim -> legal block
    n_steps = max(2, pl.cdiv(B, tb_cap))
    tb = pl.cdiv(pl.cdiv(B, n_steps), 128) * 128
    return max(128, min(tb, tb_cap))


def actor_critic_forward(x, packed, action_dim):
    """x: [B, state_dim] f32.  packed: slabs from pack_params()."""
    W1T, B1, W2T, B2 = packed["W1T"], packed["B1"], packed["W2T"], packed["B2"]
    B, S = x.shape
    H3 = W1T.shape[0]   # 3 * hidden
    OUT = W2T.shape[0]  # 2 * action_dim + 1

    # Layout plumbing: put the batch dim on lanes so the epilogue is lane-dense.
    x_fm = x.T  # [S, B]

    TB = _choose_batch_tile(B)
    grid = (pl.cdiv(B, TB),)

    flops = 2 * B * (S * H3 + H3 * OUT)
    transcendentals = 3 * B * OUT
    bytes_accessed = (
        x.size * x.dtype.itemsize
        + W1T.size * W1T.dtype.itemsize + W2T.size * W2T.dtype.itemsize
        + B1.size * 4 + B2.size * 4
        + B * OUT * 4
    )

    out_fm = pl.pallas_call(
        functools.partial(actor_critic_kernel, action_dim),
        out_shape=jax.ShapeDtypeStruct((OUT, B), jnp.float32),
        grid=grid,
        in_specs=[
            pl.BlockSpec((S, TB), lambda i: (0, i)),    # x^T: blocked over batch lanes
            pl.BlockSpec((H3, S), lambda i: (0, 0)),    # W1^T slab: VMEM-resident
            pl.BlockSpec((H3, 1), lambda i: (0, 0)),    # b1 slab
            pl.BlockSpec((OUT, H3), lambda i: (0, 0)),  # W2^T slab (block-diagonal)
            pl.BlockSpec((OUT, 1), lambda i: (0, 0)),   # b2 slab
        ],
        out_specs=pl.BlockSpec((OUT, TB), lambda i: (0, i)),
        compiler_params=pltpu.CompilerParams(
            dimension_semantics=("parallel",),
            vmem_limit_bytes=32 * 1024 * 1024,
        ),
        cost_estimate=pl.CostEstimate(
            flops=flops, transcendentals=transcendentals, bytes_accessed=bytes_accessed
        ),
    )(x_fm, W1T, B1, W2T, B2)

    mu = out_fm[:action_dim].T                       # [B, A]
    sigma = out_fm[action_dim:2 * action_dim].T      # [B, A]
    value = out_fm[2 * action_dim:].T                # [B, 1]
    return mu, sigma, value


def init_params(key, state_dim, action_dim, hidden=HIDDEN):
    """PyTorch-Linear-style init: U(-1/sqrt(fan_in), 1/sqrt(fan_in)).
    Weights stored as [in, out]; biases as [1, out]."""
    def linear(k, fan_in, fan_out):
        kw, kb = jax.random.split(k)
        bound = 1.0 / jnp.sqrt(jnp.float32(fan_in))
        w = jax.random.uniform(kw, (fan_in, fan_out), jnp.float32, -bound, bound)
        b = jax.random.uniform(kb, (1, fan_out), jnp.float32, -bound, bound)
        return w, b

    keys = jax.random.split(key, 6)
    wm1, bm1 = linear(keys[0], state_dim, hidden)
    wm2, bm2 = linear(keys[1], hidden, action_dim)
    ws1, bs1 = linear(keys[2], state_dim, hidden)
    ws2, bs2 = linear(keys[3], hidden, action_dim)
    wc1, bc1 = linear(keys[4], state_dim, hidden)
    wc2, bc2 = linear(keys[5], hidden, 1)
    return dict(
        wm1=wm1, bm1=bm1, wm2=wm2, bm2=bm2,
        ws1=ws1, bs1=bs1, ws2=ws2, bs2=bs2,
        wc1=wc1, bc1=bc1, wc2=wc2, bc2=bc2,
    )


def pack_params(p, hidden=HIDDEN, compute_dtype=jnp.float32):
    """Pack the 12 per-layer tensors into 4 feature-major slabs.

    compute_dtype=bf16 keeps the MXU on its fast path on v6e/v7x and halves
    weight DMA; biases and all epilogue math stay f32 (v5e VPU/EUP are f32-only).
    """
    A = p["wm2"].shape[1]
    OUT = 2 * A + 1

    # First layer: branches independent -> concat on output dim, then transpose.
    W1 = jnp.concatenate([p["wm1"], p["ws1"], p["wc1"]], axis=1)        # [S, 3H]
    W1T = W1.T.astype(compute_dtype)                                    # [3H, S]
    B1 = jnp.concatenate([p["bm1"], p["bs1"], p["bc1"]], axis=1).T      # [3H, 1]
    B1 = B1.astype(jnp.float32)

    # Second layer: block-diagonal so one dot reproduces the 3 branch matmuls.
    W2 = jnp.zeros((3 * hidden, OUT), jnp.float32)
    W2 = W2.at[0:hidden, 0:A].set(p["wm2"])
    W2 = W2.at[hidden:2 * hidden, A:2 * A].set(p["ws2"])
    W2 = W2.at[2 * hidden:3 * hidden, 2 * A:].set(p["wc2"])
    W2T = W2.T.astype(compute_dtype)                                    # [OUT, 3H]
    B2 = jnp.concatenate([p["bm2"], p["bs2"], p["bc2"]], axis=1).T      # [OUT, 1]
    B2 = B2.astype(jnp.float32)

    return dict(W1T=W1T, B1=B1, W2T=W2T, B2=B2)


def reference_forward(x, p):
    """Pure-JAX reference matching the PyTorch module semantics."""
    hm = jax.nn.relu(x @ p["wm1"] + p["bm1"])
    mu = 2.0 * jnp.tanh(hm @ p["wm2"] + p["bm2"])
    hs = jax.nn.relu(x @ p["ws1"] + p["bs1"])
    std_raw = jnp.maximum(hs @ p["ws2"] + p["bs2"], -4.5)   # clamp(min=-4.5)
    sigma = jax.nn.softplus(std_raw)
    hc = jax.nn.relu(x @ p["wc1"] + p["bc1"])
    value = hc @ p["wc2"] + p["bc2"]
    return mu, sigma, value


if __name__ == "__main__":
    state_dim, action_dim = 16, 4

    key = jax.random.PRNGKey(0)
    k_x, k_p, k_x2 = jax.random.split(key, 3)
    params = init_params(k_p, state_dim, action_dim)

    # --- small batch, f32 compute path (tight tolerance) ---
    batch = 8
    x = jax.random.normal(k_x, (batch, state_dim), dtype=jnp.float32)
    packed_f32 = pack_params(params, compute_dtype=jnp.float32)
    mu, sigma, value = actor_critic_forward(x, packed_f32, action_dim)
    jax.block_until_ready((mu, sigma, value))

    mu_ref, sigma_ref, value_ref = reference_forward(x, params)
    assert mu.shape == (batch, action_dim)
    assert sigma.shape == (batch, action_dim)
    assert value.shape == (batch, 1)
    assert jnp.allclose(mu, mu_ref, atol=1e-4), "mu mismatch (f32)"
    assert jnp.allclose(sigma, sigma_ref, atol=1e-4), "sigma mismatch (f32)"
    assert jnp.allclose(value, value_ref, atol=1e-4), "value mismatch (f32)"

    # --- medium batch (grid > 1, megacore path), bf16 matmul operands ---
    batch2 = 384
    x2 = jax.random.normal(k_x2, (batch2, state_dim), dtype=jnp.float32)
    packed_bf16 = pack_params(params, compute_dtype=jnp.bfloat16)
    mu2, sigma2, value2 = actor_critic_forward(x2, packed_bf16, action_dim)
    jax.block_until_ready((mu2, sigma2, value2))

    mu2_ref, sigma2_ref, value2_ref = reference_forward(x2, params)
    assert mu2.shape == (batch2, action_dim)
    assert sigma2.shape == (batch2, action_dim)
    assert value2.shape == (batch2, 1)
    assert jnp.allclose(mu2, mu2_ref, atol=5e-2, rtol=5e-2), "mu mismatch (bf16)"
    assert jnp.allclose(sigma2, sigma2_ref, atol=5e-2, rtol=5e-2), "sigma mismatch (bf16)"
    assert jnp.allclose(value2, value2_ref, atol=5e-2, rtol=5e-2), "value mismatch (bf16)"

    print("KERNEL_OK")
</pallas_src>

<mosaic_0001>
module attributes {stable_mosaic.version = 11 : i64} {
  func.func @actor_critic_kernel(%arg0: i32, %arg1: memref<16x8xf32, #tpu.memory_space<vmem>>, %arg2: memref<192x16xf32, #tpu.memory_space<vmem>>, %arg3: memref<192x1xf32, #tpu.memory_space<vmem>>, %arg4: memref<9x192xf32, #tpu.memory_space<vmem>>, %arg5: memref<9x1xf32, #tpu.memory_space<vmem>>, %arg6: memref<9x8xf32, #tpu.memory_space<vmem>>) attributes {dimension_semantics = [#tpu.dimension_semantics<parallel>], iteration_bounds = array<i64: 1>, scalar_prefetch = 0 : i64, scratch_operands = 0 : i64, tpu.core_type = #tpu.core_type<tc>, window_params = [{transform_indices = @transform_0, window_bounds = array<i64: 16, 8>}, {pipeline_mode = #tpu.pipeline_mode<synchronous>, transform_indices = @transform_1, window_bounds = array<i64: 192, 16>}, {pipeline_mode = #tpu.pipeline_mode<synchronous>, transform_indices = @transform_2, window_bounds = array<i64: 192, 1>}, {pipeline_mode = #tpu.pipeline_mode<synchronous>, transform_indices = @transform_3, window_bounds = array<i64: 9, 192>}, {pipeline_mode = #tpu.pipeline_mode<synchronous>, transform_indices = @transform_4, window_bounds = array<i64: 9, 1>}, {transform_indices = @transform_5, window_bounds = array<i64: 9, 8>}]} {
    %c0 = arith.constant 0 : index
    %c0_0 = arith.constant 0 : index
    %0 = vector.load %arg1[%c0, %c0_0] : memref<16x8xf32, #tpu.memory_space<vmem>>, vector<16x8xf32>
    %c0_1 = arith.constant 0 : index
    %c0_2 = arith.constant 0 : index
    %1 = vector.load %arg2[%c0_1, %c0_2] : memref<192x16xf32, #tpu.memory_space<vmem>>, vector<192x16xf32>
    %cst = arith.constant dense<0.000000e+00> : vector<192x8xf32>
    %2 = tpu.matmul %1, %0, %cst {dimension_numbers = #tpu.dot_dimension_numbers<[1], [0], [0], [1], [0, 0, 1, 1], [], []>} : vector<192x16xf32>, vector<16x8xf32>, vector<192x8xf32> -> vector<192x8xf32>
    %c0_3 = arith.constant 0 : index
    %c0_4 = arith.constant 0 : index
    %3 = vector.load %arg3[%c0_3, %c0_4] : memref<192x1xf32, #tpu.memory_space<vmem>>, vector<192x1xf32>
    %4 = vector.broadcast %3 : vector<192x1xf32> to vector<192x8xf32>
    %5 = arith.addf %2, %4 : vector<192x8xf32>
    %cst_5 = arith.constant 0.000000e+00 : f32
    %6 = vector.broadcast %cst_5 : f32 to vector<192x8xf32>
    %7 = arith.maximumf %5, %6 : vector<192x8xf32>
    %c0_6 = arith.constant 0 : index
    %c0_7 = arith.constant 0 : index
    %8 = vector.load %arg4[%c0_6, %c0_7] : memref<9x192xf32, #tpu.memory_space<vmem>>, vector<9x192xf32>
    %cst_8 = arith.constant dense<0.000000e+00> : vector<9x8xf32>
    %9 = tpu.matmul %8, %7, %cst_8 {dimension_numbers = #tpu.dot_dimension_numbers<[1], [0], [0], [1], [0, 0, 1, 1], [], []>} : vector<9x192xf32>, vector<192x8xf32>, vector<9x8xf32> -> vector<9x8xf32>
    %c0_9 = arith.constant 0 : index
    %c0_10 = arith.constant 0 : index
    %10 = vector.load %arg5[%c0_9, %c0_10] : memref<9x1xf32, #tpu.memory_space<vmem>>, vector<9x1xf32>
    %11 = vector.broadcast %10 : vector<9x1xf32> to vector<9x8xf32>
    %12 = arith.addf %9, %11 : vector<9x8xf32>
    %13 = tpu.iota {dimensions = array<i32: 0>} : vector<9x8xi32>
    %14 = math.tanh %12 : vector<9x8xf32>
    %cst_11 = arith.constant 2.000000e+00 : f32
    %15 = vector.broadcast %cst_11 : f32 to vector<9x8xf32>
    %16 = arith.mulf %15, %14 : vector<9x8xf32>
    %cst_12 = arith.constant -4.500000e+00 : f32
    %17 = vector.broadcast %cst_12 : f32 to vector<9x8xf32>
    %18 = arith.maximumf %12, %17 : vector<9x8xf32>
    %cst_13 = arith.constant 0.000000e+00 : f32
    %19 = vector.broadcast %cst_13 : f32 to vector<9x8xf32>
    %20 = arith.maximumf %18, %19 : vector<9x8xf32>
    %21 = math.absf %18 : vector<9x8xf32>
    %cst_14 = arith.constant 0.000000e+00 : f32
    %22 = vector.broadcast %cst_14 : f32 to vector<9x8xf32>
    %23 = arith.subf %22, %21 : vector<9x8xf32>
    %24 = math.exp %23 : vector<9x8xf32>
    %25 = math.log1p %24 : vector<9x8xf32>
    %26 = arith.addf %20, %25 : vector<9x8xf32>
    %c4_i32 = arith.constant 4 : i32
    %27 = vector.broadcast %c4_i32 : i32 to vector<9x8xi32>
    %28 = arith.cmpi slt, %13, %27 : vector<9x8xi32>
    %c8_i32 = arith.constant 8 : i32
    %29 = vector.broadcast %c8_i32 : i32 to vector<9x8xi32>
    %30 = arith.cmpi slt, %13, %29 : vector<9x8xi32>
    %31 = arith.select %30, %26, %12 : vector<9x8xi1>, vector<9x8xf32>
    %32 = arith.select %28, %16, %31 : vector<9x8xi1>, vector<9x8xf32>
    %c0_15 = arith.constant 0 : index
    %c0_16 = arith.constant 0 : index
    %33 = vector.load %arg6[%c0_15, %c0_16] : memref<9x8xf32, #tpu.memory_space<vmem>>, vector<9x8xf32>
    tpu.vector_store %arg6[%c0_15, %c0_16], %32 {strides = array<i32>} : memref<9x8xf32, #tpu.memory_space<vmem>>, vector<9x8xf32>,
    return
  }
  func.func @transform_0(%arg0: i32) -> (i32, i32) {
    %c0_i32 = arith.constant 0 : i32
    %c0_i32_0 = arith.constant 0 : i32
    return %c0_i32, %arg0 : i32, i32
  }
  func.func @transform_1(%arg0: i32) -> (i32, i32) {
    %c0_i32 = arith.constant 0 : i32
    %c0_i32_0 = arith.constant 0 : i32
    %c0_i32_1 = arith.constant 0 : i32
    return %c0_i32, %c0_i32_0 : i32, i32
  }
  func.func @transform_2(%arg0: i32) -> (i32, i32) {
    %c0_i32 = arith.constant 0 : i32
    %c0_i32_0 = arith.constant 0 : i32
    %c0_i32_1 = arith.constant 0 : i32
    return %c0_i32, %c0_i32_0 : i32, i32
  }
  func.func @transform_3(%arg0: i32) -> (i32, i32) {
    %c0_i32 = arith.constant 0 : i32
    %c0_i32_0 = arith.constant 0 : i32
    %c0_i32_1 = arith.constant 0 : i32
    return %c0_i32, %c0_i32_0 : i32, i32
  }
  func.func @transform_4(%arg0: i32) -> (i32, i32) {
    %c0_i32 = arith.constant 0 : i32
    %c0_i32_0 = arith.constant 0 : i32
    %c0_i32_1 = arith.constant 0 : i32
    return %c0_i32, %c0_i32_0 : i32, i32
  }
  func.func @transform_5(%arg0: i32) -> (i32, i32) {
    %c0_i32 = arith.constant 0 : i32
    %c0_i32_0 = arith.constant 0 : i32
    return %c0_i32, %arg0 : i32, i32
  }
}

</mosaic_0001>

<bundles_post_ra>
// kernel: tpu_custom_call.1
= control target key start
LH: loop header
LB: loop body
LE: loop exit
PB: predicated region body
PF: predicated region fallthrough
CT: control target
= control target key end

     0   :  { %vm190_vm0 = vcmask 130048   ;;  %v727_v3 = vmov 0   ;;  %v728_v53 = vmov 0.0   ;;  %vm488_vm1 = vcmask 523264   ;;  %s1010_s0 = inlined_call_operand.vmem [shape: f32[16,8], index: 0, kind: input, shape index: {}]   ;;  %s1011_s1 = inlined_call_operand.vmem [shape: f32[192,16], index: 1, kind: input, shape index: {}]   ;;  %s1012_s2 = inlined_call_operand.vmem [shape: f32[192,1], index: 2, kind: input, shape index: {}]   ;;  %s1013_s4 = inlined_call_operand.vmem [shape: f32[9,1], index: 4, kind: input, shape index: {}]   ;;  %s1014_s3 = inlined_call_operand.vmem [shape: f32[9,192], index: 3, kind: input, shape index: {}]   ;;  %s1015_s5 = inlined_call_operand.vmem [shape: f32[9,8], index: 5, kind: output, shape index: {}]  }
   0x1   :  { %v21_v0 = vld [vmem:[%s1010_s0 + $0x8] sm:$0xff]  ;;  %v20_v1 = vld [vmem:[%s1010_s0] sm:$0xff]  ;;  %719 = vset.pattern.permute.xlu0 %v727_v3  ;;  %720 = vset.pattern.permute.xlu1 %v727_v3  ;;  %v24_v5 = vld [vmem:[%s1011_s1 + $0x10] sm:$0xff]  ;;  %vm619_vm2 = vcmask 57344   ;;  %vm617_vm5 = vcmask 64512  }
   0x2   :  { %v22_v2 = vld [vmem:[%s1011_s1] sm:$0xff]  ;;  %677 = vmatprep.subr.mxu0 %v21_v0  ;;  %v23_v4 = vld [vmem:[%s1011_s1 + $0x8] sm:$0xff]  ;;  %v25_v6 = vld [vmem:[%s1011_s1 + $0x18] sm:$0xff]  ;;  %495 = vmatprep.subr.mxu1 %v728_v53 }
   0x3   :  { %681 = vmatprep.mubr.msk.f32.mxu0 %vm190_vm0, %v22_v2  ;;  %678 = vmatpush3.msra.mxu0 %v21_v0  ;;  %v26_v7 = vld [vmem:[%s1011_s1 + $0x20] sm:$0xff]  ;;  %v61_v8 = vld [vmem:[%s1012_s2 + $0x78] sm:$0xff]  ;;  %v59_v9 = vld [vmem:[%s1012_s2 + $0x68] sm:$0xff] }
   0x4   :  { %679 = vmatprep.subr.mxu0 %v20_v1  ;;  %147 = vperm.xlu0 %719, %v61_v8   ;;  %v27_v10 = vld [vmem:[%s1011_s1 + $0x28] sm:$0xff]  ;;  %v60_v11 = vld [vmem:[%s1012_s2 + $0x70] sm:$0xff]  ;;  %v58_v13 = vld [vmem:[%s1012_s2 + $0x60] sm:$0xff] }
   0x5   :  { %680 = vmatpush3.msra.mxu0 %v20_v1  ;;  %137 = vperm.xlu1 %720, %v59_v9   ;;  %v28_v12 = vld [vmem:[%s1011_s1 + $0x30] sm:$0xff]  ;;  %v29_v14 = vld [vmem:[%s1011_s1 + $0x38] sm:$0xff]  ;;  %v30_v16 = vld [vmem:[%s1011_s1 + $0x40] sm:$0xff] }
   0x6   :  { %682 = vmatmul.mubr.msk.f32.vlgmr.msra.gmra.mxu0 %vm190_vm0, %v23_v4  ;;  %v57_v15 = vld [vmem:[%s1012_s2 + $0x58] sm:$0xff]  ;;  %v56_v17 = vld [vmem:[%s1012_s2 + $0x50] sm:$0xff]  ;;  %v31_v18 = vld [vmem:[%s1011_s1 + $0x48] sm:$0xff] }
   0x7   :  { %684 = vmatprep.mubr.msk.f32.mxu0 %vm190_vm0, %v24_v5  ;;  %v55_v19 = vld [vmem:[%s1012_s2 + $0x48] sm:$0xff]  ;;  %v32_v20 = vld [vmem:[%s1011_s1 + $0x50] sm:$0xff]  ;;  %v54_v21 = vld [vmem:[%s1012_s2 + $0x40] sm:$0xff] }
   0x8   :  { %142 = vperm.xlu0 %719, %v60_v11   ;;  %v33_v22 = vld [vmem:[%s1011_s1 + $0x58] sm:$0xff]  ;;  %v34_v24 = vld [vmem:[%s1011_s1 + $0x60] sm:$0xff]  ;;  %v52_v25 = vld [vmem:[%s1012_s2 + $0x30] sm:$0xff] }
   0x9   :  { %132 = vperm.xlu1 %720, %v58_v13   ;;  %v53_v23 = vld [vmem:[%s1012_s2 + $0x38] sm:$0xff]  ;;  %v35_v26 = vld [vmem:[%s1011_s1 + $0x68] sm:$0xff]  ;;  %v36_v28 = vld [vmem:[%s1011_s1 + $0x70] sm:$0xff] }
   0xa   :  { %685 = vmatmul.mubr.msk.f32.gmra.mxu0 %vm190_vm0, %v25_v6  ;;  %v51_v27 = vld [vmem:[%s1012_s2 + $0x28] sm:$0xff]  ;;  %v50_v29 = vld [vmem:[%s1012_s2 + $0x20] sm:$0xff]  ;;  %v37_v30 = vld [vmem:[%s1011_s1 + $0x78] sm:$0xff] }
   0xb   :  { %687 = vmatprep.mubr.msk.f32.mxu0 %vm190_vm0, %v26_v7  ;;  %v49_v31 = vld [vmem:[%s1012_s2 + $0x18] sm:$0xff]  ;;  %v38_v32 = vld [vmem:[%s1011_s1 + $0x80] sm:$0xff]  ;;  %v48_v33 = vld [vmem:[%s1012_s2 + $0x10] sm:$0xff] }
   0xc   :  { %127 = vperm.xlu0 %719, %v57_v15   ;;  %v39_v34 = vld [vmem:[%s1011_s1 + $0x88] sm:$0xff]  ;;  %v40_v36 = vld [vmem:[%s1011_s1 + $0x90] sm:$0xff]  ;;  %v46_v37 = vld [vmem:[%s1012_s2] sm:$0xff] }
   0xd   :  { %122 = vperm.xlu1 %720, %v56_v17   ;;  %v47_v35 = vld [vmem:[%s1012_s2 + $0x8] sm:$0xff]  ;;  %v41_v38 = vld [vmem:[%s1011_s1 + $0x98] sm:$0xff]  ;;  %v42_v40 = vld [vmem:[%s1011_s1 + $0xa0] sm:$0xff] }
   0xe   :  { %688 = vmatmul.mubr.msk.f32.gmra.mxu0 %vm190_vm0, %v27_v10  ;;  %v69_v39 = vld [vmem:[%s1012_s2 + $0xb8] sm:$0xff]  ;;  %v68_v41 = vld [vmem:[%s1012_s2 + $0xb0] sm:$0xff]  ;;  %v43_v42 = vld [vmem:[%s1011_s1 + $0xa8] sm:$0xff] }
   0xf   :  { %690 = vmatprep.mubr.msk.f32.mxu0 %vm190_vm0, %v28_v12  ;;  %v67_v43 = vld [vmem:[%s1012_s2 + $0xa8] sm:$0xff]  ;;  %v44_v44 = vld [vmem:[%s1011_s1 + $0xb0] sm:$0xff]  ;;  %v66_v45 = vld [vmem:[%s1012_s2 + $0xa0] sm:$0xff] }
  0x10   :  { %117 = vperm.xlu0 %719, %v55_v19   ;;  %v45_v46 = vld [vmem:[%s1011_s1 + $0xb8] sm:$0xff]  ;;  %v64_v48 = vld [vmem:[%s1012_s2 + $0x90] sm:$0xff]  ;;  %v63_v49 = vld [vmem:[%s1012_s2 + $0x88] sm:$0xff] }
  0x11   :  { %112 = vperm.xlu1 %720, %v54_v21   ;;  %v65_v47 = vld [vmem:[%s1012_s2 + $0x98] sm:$0xff]  ;;  %v62_v50 = vld [vmem:[%s1012_s2 + $0x80] sm:$0xff]  ;;  %v477_v52 = vld [vmem:[%s1013_s4 + $0x8] sm:$0x1] }
  0x12   :  { %691 = vmatmul.mubr.msk.f32.gmra.mxu0 %vm190_vm0, %v29_v14  ;;  %v476_v51 = vld [vmem:[%s1013_s4] sm:$0xff]  ;;  %v473_v54 = vld [vmem:[%s1014_s3 + $0x8] sm:$0xff] }
  0x13   :  { %693 = vmatprep.mubr.msk.f32.mxu0 %vm190_vm0, %v30_v16  ;;  %649 = vmatprep.mubr.msk.f32.mxu1 %vm488_vm1, %v473_v54 }
  0x14   :  { %107 = vperm.xlu0 %719, %v53_v23  }
  0x15   :  { %102 = vperm.xlu1 %720, %v52_v25  }
  0x16   :  { %694 = vmatmul.mubr.msk.f32.gmra.mxu0 %vm190_vm0, %v31_v18 }
  0x17   :  { %696 = vmatprep.mubr.msk.f32.mxu0 %vm190_vm0, %v32_v20 }
  0x18   :  { %97 = vperm.xlu0 %719, %v51_v27  }
  0x19   :  { %92 = vperm.xlu1 %720, %v50_v29  }
  0x1a   :  { %697 = vmatmul.mubr.msk.f32.gmra.mxu0 %vm190_vm0, %v33_v22 }
  0x1b   :  { %699 = vmatprep.mubr.msk.f32.mxu0 %vm190_vm0, %v34_v24 }
  0x1c   :  { %87 = vperm.xlu0 %719, %v49_v31  }
  0x1d   :  { %82 = vperm.xlu1 %720, %v48_v33  }
  0x1e   :  { %700 = vmatmul.mubr.msk.f32.gmra.mxu0 %vm190_vm0, %v35_v26 }
  0x1f   :  { %702 = vmatprep.mubr.msk.f32.mxu0 %vm190_vm0, %v36_v28 }
  0x20   :  { %77 = vperm.xlu0 %719, %v47_v35  }
  0x21   :  { %72 = vperm.xlu1 %720, %v46_v37  }
  0x22   :  { %703 = vmatmul.mubr.msk.f32.gmra.mxu0 %vm190_vm0, %v37_v30 }
  0x23   :  { %705 = vmatprep.mubr.msk.f32.mxu0 %vm190_vm0, %v38_v32 }
  0x24   :  { %187 = vperm.xlu0 %719, %v69_v39  }
  0x25   :  { %182 = vperm.xlu1 %720, %v68_v41  }
  0x26   :  { %706 = vmatmul.mubr.msk.f32.gmra.mxu0 %vm190_vm0, %v39_v34 }
  0x27   :  { %708 = vmatprep.mubr.msk.f32.mxu0 %vm190_vm0, %v40_v36 }
  0x28   :  { %177 = vperm.xlu0 %719, %v67_v43  }
  0x29   :  { %172 = vperm.xlu1 %720, %v66_v45  }
  0x2a   :  { %709 = vmatmul.mubr.msk.f32.gmra.mxu0 %vm190_vm0, %v41_v38 }
  0x2b   :  { %711 = vmatprep.mubr.msk.f32.mxu0 %vm190_vm0, %v42_v40 }
  0x2c   :  { %167 = vperm.xlu0 %719, %v65_v47  }
  0x2d   :  { %162 = vperm.xlu1 %720, %v64_v48  }
  0x2e   :  { %712 = vmatmul.mubr.msk.f32.gmra.mxu0 %vm190_vm0, %v43_v42 }
  0x2f   :  { %714 = vmatprep.mubr.msk.f32.mxu0 %vm190_vm0, %v44_v44 }
  0x30   :  { %157 = vperm.xlu0 %719, %v63_v49  }
  0x31   :  { %152 = vperm.xlu1 %720, %v62_v50  }
  0x32   :  { %715 = vmatmul.mubr.msk.f32.gmra.mxu0 %vm190_vm0, %v45_v46 }
  0x34   :  { %480 = vperm.xlu0 %719, %v476_v51  }
  0x35   :  { %485 = vperm.xlu1 %720, %v477_v52  }
  0x7f   :  { %v148_v58 = vpop.permute.xlu0 %147 }
  0x80   :  { %v138_v60 = vpop.permute.xlu1 %137 }
  0x83   :  { %v143_v63 = vpop.permute.xlu0 %142 }
  0x84   :  { %v133_v1 = vpop.permute.xlu1 %132 }
  0x87   :  { %v128_v4 = vpop.permute.xlu0 %127 }
  0x88   :  { %v123_v6 = vpop.permute.xlu1 %122 }
  0x8b   :  { %v118_v9 = vpop.permute.xlu0 %117 }
  0x8c   :  { %v113_v11 = vpop.permute.xlu1 %112 }
  0x8f   :  { %v108_v15 = vpop.permute.xlu0 %107 }
  0x90   :  { %v103_v20 = vpop.permute.xlu1 %102 }
  0x93   :  { %v98_v27 = vpop.permute.xlu0 %97 }
  0x94   :  { %v93_v30 = vpop.permute.xlu1 %92 }
  0x97   :  { %v88_v36 = vpop.permute.xlu0 %87 }
  0x98   :  { %v83_v40 = vpop.permute.xlu1 %82 }
  0x9b   :  { %v78_v46 = vpop.permute.xlu0 %77 }
  0x9c   :  { %v73_v49 = vpop.permute.xlu1 %72 }
  0x9f   :  { %v188_v54 = vpop.permute.xlu0 %187 }
  0xc6   :  { %v944_v55 = vpop.f32.mrf.mxu0 }
  0xc8   :  { %v946_v56 = vpop.f32.mrf.mxu0 }
  0xca   :  { %v948_v57 = vpop.f32.mrf.mxu0 }
  0xcb   :  { %v345_v51 = vadd.f32 %v948_v57, %v88_v36  ;;  %v330_v57 = vadd.f32 %v946_v56, %v73_v49 }
  0xcc   :  { %v950_v59 = vpop.f32.mrf.mxu0 }
  0xce   :  { %v689_v61 = vpop.f32.mrf.mxu0 }
  0xcf   :  { %v355_v44 = vadd.f32 %v689_v61, %v98_v27  ;;  %v183_v61 = vpop.permute.xlu1 %182 }
  0xd0   :  { %v952_v62 = vpop.f32.mrf.mxu0 }
  0xd1   :  { %v350_v47 = vadd.f32 %v952_v62, %v93_v30  ;;  %v453_v52 = vmax.f32 %v355_v44, 0.0  ;;  %v335_v62 = vadd.f32 %v944_v55, %v78_v46 }
  0xd2   :  { %v692_v0 = vpop.f32.mrf.mxu0 }
  0xd3   :  { %v365_v38 = vadd.f32 %v692_v0, %v108_v15  ;;  %v451_v0 = vmax.f32 %v345_v51, 0.0 }
  0xd4   :  { %v359_v2 = vpop.f32.mrf.mxu0 }
  0xd5   :  { %v360_v41 = vadd.f32 %v359_v2, %v103_v20  ;;  %v455_v45 = vmax.f32 %v365_v38, 0.0  ;;  %v178_v2 = vpop.permute.xlu0 %177 }
  0xd6   :  { %v695_v3 = vpop.f32.mrf.mxu0 }
  0xd7   :  { %v375_v32 = vadd.f32 %v695_v3, %v118_v9  ;;  %v454_v48 = vmax.f32 %v360_v41, 0.0  ;;  %v570_v41 = vlaneseq }
  0xd8   :  { %v369_v5 = vpop.f32.mrf.mxu0 }
  0xd9   :  { %v370_v34 = vadd.f32 %v369_v5, %v113_v11  ;;  %v457_v39 = vmax.f32 %v375_v32, 0.0  ;;  %v173_v5 = vpop.permute.xlu1 %172  ;;  %v168_v56 = vpop.permute.xlu0 %167  ;;  %v571_v44 = vshrl.u32 %v570_v41, 7 }
  0xda   :  { %v698_v7 = vpop.f32.mrf.mxu0 }
  0xdb   :  { %v385_v25 = vadd.f32 %v698_v7, %v128_v4  ;;  %v456_v42 = vmax.f32 %v370_v34, 0.0  ;;  %vm609_vm4 = vcmp.lt.s32.totalorder %v571_v44, 4 }
  0xdc   :  { %v379_v8 = vpop.f32.mrf.mxu0 }
  0xdd   :  { %v380_v28 = vadd.f32 %v379_v8, %v123_v6  ;;  %v459_v33 = vmax.f32 %v385_v25, 0.0  ;;  %v448_v6 = vmax.f32 %v330_v57, 0.0  ;;  %v163_v11 = vpop.permute.xlu1 %162 }
  0xde   :  { %v701_v10 = vpop.f32.mrf.mxu0 }
  0xdf   :  { %v395_v17 = vadd.f32 %v701_v10, %v138_v60  ;;  %v458_v35 = vmax.f32 %v380_v28, 0.0  ;;  %v452_v60 = vmax.f32 %v350_v47, 0.0 }
  0xe0   :  { %v389_v12 = vpop.f32.mrf.mxu0 }
  0xe1   :  { %v390_v22 = vadd.f32 %v389_v12, %v133_v1  ;;  %v461_v26 = vmax.f32 %v395_v17, 0.0 }
  0xe2   :  { %v704_v13 = vpop.f32.mrf.mxu0 }
  0xe3   :  { %v405_v14 = vadd.f32 %v704_v13, %v148_v58  ;;  %v460_v29 = vmax.f32 %v390_v22, 0.0  ;;  %v340_v58 = vadd.f32 %v950_v59, %v83_v40  ;;  %v449_v59 = vmax.f32 %v335_v62, 0.0 }
  0xe4   :  { %v399_v16 = vpop.f32.mrf.mxu0 }
  0xe5   :  { %v463_v18 = vmax.f32 %v405_v14, 0.0  ;;  %v400_v19 = vadd.f32 %v399_v16, %v143_v63  ;;  %v450_v1 = vmax.f32 %v340_v58, 0.0  ;;  %v158_v16 = vpop.permute.xlu0 %157 }
  0xe6   :  { %v954_v21 = vpop.f32.mrf.mxu0 }
  0xe7   :  { %v462_v23 = vmax.f32 %v400_v19, 0.0  ;;  %496 = vmatpush1.msra.mxu1 %v463_v18  ;;  %v415_v17 = vadd.f32 %v954_v21, %v158_v16  ;;  %v153_v19 = vpop.permute.xlu1 %152  ;;  %v472_v21 = vld [vmem:[%s1014_s3] sm:$0xff] }
  0xe8   :  { %v956_v24 = vpop.f32.mrf.mxu0  ;;  %497 = vmatprep.subr.mxu1 %v728_v53 }
  0xe9   :  { %498 = vmatpush1.msra.mxu1 %v462_v23  ;;  %v410_v20 = vadd.f32 %v956_v24, %v153_v19  ;;  %v465_v23 = vmax.f32 %v415_v17, 0.0  ;;  %v475_v24 = vld [vmem:[%s1014_s3 + $0x18] sm:$0x1]  ;;  %v481_v27 = vpop.permute.xlu0 %480 }
  0xea   :  { %499 = vmatprep.subr.mxu1 %v728_v53  ;;  %v960_v31 = vpop.f32.mrf.mxu0 }
  0xeb   :  { %500 = vmatpush1.msra.mxu1 %v461_v26  ;;  %v425_v12 = vadd.f32 %v960_v31, %v168_v56  ;;  %v464_v25 = vmax.f32 %v410_v20, 0.0  ;;  %v474_v26 = vld [vmem:[%s1014_s3 + $0x10] sm:$0x1]  ;;  %v486_v32 = vpop.permute.xlu1 %485 }
  0xec   :  { %501 = vmatprep.subr.mxu1 %v728_v53  ;;  %v964_v37 = vpop.f32.mrf.mxu0 }
  0xed   :  { %502 = vmatpush1.msra.mxu1 %v460_v29  ;;  %v420_v14 = vadd.f32 %v964_v37, %v163_v11  ;;  %v467_v18 = vmax.f32 %v425_v12, 0.0 }
  0xee   :  { %503 = vmatprep.subr.mxu1 %v728_v53  ;;  %v713_v43 = vpop.f32.mrf.mxu0 }
  0xef   :  { %504 = vmatpush1.msra.mxu1 %v459_v33  ;;  %v435_v7 = vadd.f32 %v713_v43, %v178_v2  ;;  %v466_v22 = vmax.f32 %v420_v14, 0.0 }
  0xf0   :  { %505 = vmatprep.subr.mxu1 %v728_v53  ;;  %v429_v50 = vpop.f32.mrf.mxu0 }
  0xf1   :  { %506 = vmatpush1.msra.mxu1 %v458_v35  ;;  %v430_v9 = vadd.f32 %v429_v50, %v173_v5  ;;  %v469_v13 = vmax.f32 %v435_v7, 0.0 }
  0xf2   :  { %507 = vmatprep.subr.mxu1 %v728_v53  ;;  %v716_v63 = vpop.f32.mrf.mxu0 }
  0xf3   :  { %508 = vmatpush1.msra.mxu1 %v457_v39  ;;  %v445_v4 = vadd.f32 %v716_v63, %v188_v54  ;;  %v468_v15 = vmax.f32 %v430_v9, 0.0 }
  0xf4   :  { %509 = vmatprep.subr.mxu1 %v728_v53  ;;  %v439_v3 = vpop.f32.mrf.mxu0 }
  0xf5   :  { %510 = vmatpush1.msra.mxu1 %v456_v42  ;;  %v440_v55 = vadd.f32 %v439_v3, %v183_v61  ;;  %v471_v8 = vmax.f32 %v445_v4, 0.0 }
  0xf6   :  { %511 = vmatprep.subr.mxu1 %v728_v53 }
  0xf7   :  { %512 = vmatpush1.msra.mxu1 %v455_v45  ;;  %v470_v10 = vmax.f32 %v440_v55, 0.0 }
  0xf8   :  { %513 = vmatprep.subr.mxu1 %v728_v53 }
  0xf9   :  { %514 = vmatpush1.msra.mxu1 %v454_v48 }
  0xfa   :  { %515 = vmatprep.subr.mxu1 %v728_v53 }
  0xfb   :  { %516 = vmatpush1.msra.mxu1 %v453_v52 }
  0xfc   :  { %517 = vmatprep.subr.mxu1 %v728_v53 }
  0xfd   :  { %518 = vmatpush1.msra.mxu1 %v452_v60 }
  0xfe   :  { %519 = vmatprep.subr.mxu1 %v728_v53 }
  0xff   :  { %520 = vmatpush1.msra.mxu1 %v451_v0 }
 0x100   :  { %521 = vmatprep.subr.mxu1 %v728_v53 }
 0x101   :  { %522 = vmatpush1.msra.mxu1 %v450_v1 }
 0x102   :  { %523 = vmatprep.subr.mxu1 %v728_v53 }
 0x103   :  { %524 = vmatpush1.msra.mxu1 %v449_v59 }
 0x104   :  { %525 = vmatprep.subr.mxu1 %v728_v53 }
 0x105   :  { %526 = vmatpush1.msra.mxu1 %v448_v6 }
 0x106   :  { %543 = vmatprep.subr.mxu1 %v728_v53 }
 0x107   :  { %544 = vmatpush2.msra.mxu1 %v471_v8 }
 0x108   :  { %545 = vmatprep.subr.mxu1 %v728_v53 }
 0x109   :  { %546 = vmatpush2.msra.mxu1 %v470_v10 }
 0x10a   :  { %547 = vmatprep.subr.mxu1 %v728_v53 }
 0x10b   :  { %548 = vmatpush2.msra.mxu1 %v469_v13 }
 0x10c   :  { %549 = vmatprep.subr.mxu1 %v728_v53 }
 0x10d   :  { %550 = vmatpush2.msra.mxu1 %v468_v15 }
 0x10e   :  { %551 = vmatprep.subr.mxu1 %v728_v53 }
 0x10f   :  { %552 = vmatpush2.msra.mxu1 %v467_v18 }
 0x110   :  { %553 = vmatprep.subr.mxu1 %v728_v53 }
 0x111   :  { %554 = vmatpush2.msra.mxu1 %v466_v22 }
 0x112   :  { %555 = vmatprep.subr.mxu1 %v728_v53 }
 0x113   :  { %556 = vmatpush2.msra.mxu1 %v465_v23 }
 0x114   :  { %557 = vmatprep.subr.mxu1 %v728_v53 }
 0x115   :  { %558 = vmatpush2.msra.mxu1 %v464_v25 }
 0x116   :  { %560 = vmatmul.mubr.f32.vlgmr.msra.gmra.mxu1 %v472_v21 }
 0x117   :  { %650 = vmatprep.mubr.msk.f32.mxu1 %vm488_vm1, %v475_v24 }
 0x11a   :  { %565 = vmatmul.mubr.f32.gmra.mxu1 %v474_v26 }
 0x1d6   :  { %v561_v28 = vpop.f32.mrf.mxu1 }
 0x1d7   :  { %v562_v29 = vadd.f32 %v561_v28, %v481_v27 }
 0x1d8   :  { %v563_v30 = vpop.f32.mrf.mxu1 }
 0x1d9   :  { %v577_v31 = vmax.f32 %v562_v29, -4.5 }
 0x1da   :  { %v566_v53 = vpop.f32.mrf.mxu1 }
 0x1db   :  { %v581_v33 = vand.u32 2147483647, %v577_v31  ;;  %v567_v34 = vadd.f32 %v566_v53, %v486_v32  ;;  %v579_v49 = vmax.f32 %v577_v31, 0.0 }
 0x1dc   :  { %v568_v35 = vpop.f32.mrf.mxu1 }
 0x1dd   :  { %v583_v36 = vsub.f32 0.0, %v581_v33  ;;  %620 = vst.msk [vmem:[%s1015_s5 + $0x8] sm:$0x1] %vm619_vm2, %v567_v34 }
 0x1df   :  { %v585_v37 = vmul.f32 1.442695, %v583_v36 }
 0x1e1   :  { %721 = vpow2.f32 %v585_v37 }
 0x1ee   :  { %v722_v38 = vpop.eup %721 }
 0x1ef   :  { %v589_v39 = vadd.f32 1.0, %v722_v38  ;;  %v592_v40 = vmul.f32 -0.5, %v722_v38  ;;  %v595_v43 = vand.u32 2147483647, %v722_v38 }
 0x1f1   :  { %723 = vlog2.f32 %v589_v39  ;;  %v593_v42 = vadd.f32 1.0, %v592_v40  ;;  %vm596_vm3 = vcmp.lt.f32.partialorder %v595_v43, 0.0004427343 }
 0x1f2   :  { %725 = vtanh.f32 %v562_v29 }
 0x1f3   :  { %v594_v48 = vmul.f32 %v722_v38, %v593_v42 }
 0x1fe   :  { %v724_v45 = vpop.eup %723 }
 0x1ff   :  { %v726_v46 = vpop.eup %725  ;;  %v591_v47 = vmul.f32 0.6931472, %v724_v45 }
 0x200   :  { %v575_v51 = vmul.f32 2.0, %v726_v46 }
 0x201   :  { %v597_v50 = vsel %vm596_vm3, %v594_v48, %v591_v47 }
 0x202   :  { %v607_v52 = vadd.f32 %v597_v50, %v579_v49 }
 0x204   :  { %v615_v54 = vsel %vm609_vm4, %v575_v51, %v607_v52 }
 0x205   :  { %618 = vst.msk [vmem:[%s1015_s5] sm:$0xff] %vm617_vm5, %v615_v54 }

</bundles_post_ra>
